<compile_context>
chip_gen: v6e
topology: v6e:2x2x1
jax: 0.10.0
libtpu: 0.0.40
codegen_flags: <defaults>
</compile_context>

<pallas_src>
import functools

import jax
import jax.numpy as jnp
from jax import lax
from jax.experimental import pallas as pl
from jax.experimental.pallas import tpu as pltpu

LN_EPS = 1e-5                 # PyTorch nn.LayerNorm default
_INV_SQRT2 = 0.7071067811865476


def _round_up(x, m):
    return ((x + m - 1) // m) * m


def _gelu(x, approximate):
    if approximate:
        # tanh form -> EUP (separate VLIW slot), ~1e-3 deviation from erf GELU.
        return jax.nn.gelu(x, approximate=True)
    # F.gelu default = exact erf formulation.
    return 0.5 * x * (1.0 + lax.erf(x * _INV_SQRT2))


def _vmem_capacity_bytes():
    try:
        return int(pltpu.get_tpu_info().vmem_capacity_bytes)
    except Exception:
        return 64 * 1024 * 1024        # conservative: v7x per-TensorCore VMEM


def _pick_row_tile(n, target):
    """Row tile: multiple of 8, <= target, padded-row waste bounded (~12.5%)."""
    n8 = _round_up(max(n, 1), 8)
    target = max(64, _round_up(target, 64))
    if n8 <= target:
        return n8
    c = target
    while c > 64 and (_round_up(n, c) - n) * 8 > n:
        c //= 2
    return c


# ----------------------- fused kernel (weights resident) ---------------------

def _fused_kernel(x_ref, g1_ref, b1_ref, w1_ref, bias1_ref,
                  g2_ref, b2_ref, w2_ref, bias2_ref, o_ref,
                  *, d_true, h_true, approx_gelu):
    x = x_ref[...].astype(jnp.float32)                         # [tm, Dp]

    # ---- LayerNorm 1: fused sum / sum-of-squares over the TRUE feature dim.
    # Padded lanes of x are zero and padded gamma/beta are zero -> no mask.
    inv_d = 1.0 / d_true
    mu = jnp.sum(x, axis=-1, keepdims=True) * inv_d
    ms = jnp.sum(x * x, axis=-1, keepdims=True) * inv_d
    var = jnp.maximum(ms - mu * mu, 0.0)
    h = (x - mu) * lax.rsqrt(var + LN_EPS) * g1_ref[...] + b1_ref[...]
    del x                                 # x_ref is re-read at the residual add

    h = _gelu(h, approx_gelu)

    # ---- Linear 1 (D -> H): bf16 operands on the MXU, f32 accumulation ----
    h = jnp.dot(h.astype(jnp.bfloat16), w1_ref[...],
                preferred_element_type=jnp.float32) + bias1_ref[...]

    # ---- LayerNorm 2 over the TRUE hidden dim (padded hidden lanes are 0) ----
    inv_h = 1.0 / h_true
    mu2 = jnp.sum(h, axis=-1, keepdims=True) * inv_h
    ms2 = jnp.sum(h * h, axis=-1, keepdims=True) * inv_h
    var2 = jnp.maximum(ms2 - mu2 * mu2, 0.0)
    h = (h - mu2) * lax.rsqrt(var2 + LN_EPS) * g2_ref[...] + b2_ref[...]

    h = _gelu(h, approx_gelu)

    # ---- Dropout(p=0.1): identity in eval mode ----
    # TODO(synk): training-mode dropout (pltpu.prng_random_bits mask) not emitted.

    # ---- Linear 2 (H -> D) + residual (re-read the resident input block) ----
    out = jnp.dot(h.astype(jnp.bfloat16), w2_ref[...],
                  preferred_element_type=jnp.float32) + bias2_ref[...]
    o_ref[...] = (out + x_ref[...].astype(jnp.float32)).astype(o_ref.dtype)


# ------------------ streaming kernels (weights chunked over H) ---------------

def _stream1_kernel(x_ref, g1_ref, b1_ref, w1_ref, bias1_ref,
                    h_ref, stats_ref, xn_ref,
                    *, d_true, approx_gelu):
    """Pass 1: GELU(LN1(x)) @ w1 per hidden chunk; accumulate LN2 sum/sumsq."""
    j = pl.program_id(1)

    @pl.when(j == 0)
    def _():
        x = x_ref[...].astype(jnp.float32)
        inv_d = 1.0 / d_true
        mu = jnp.sum(x, axis=-1, keepdims=True) * inv_d
        ms = jnp.sum(x * x, axis=-1, keepdims=True) * inv_d
        var = jnp.maximum(ms - mu * mu, 0.0)
        xn = (x - mu) * lax.rsqrt(var + LN_EPS) * g1_ref[...] + b1_ref[...]
        xn_ref[...] = _gelu(xn, approx_gelu).astype(xn_ref.dtype)
        stats_ref[...] = jnp.zeros_like(stats_ref)

    hc = jnp.dot(xn_ref[...], w1_ref[...],
                 preferred_element_type=jnp.float32) + bias1_ref[...]
    h_ref[...] = hc.astype(h_ref.dtype)

    # LN2 statistics (padded hidden lanes of hc are zero -> no mask needed).
    s = jnp.sum(hc, axis=-1, keepdims=True)
    ss = jnp.sum(hc * hc, axis=-1, keepdims=True)
    lane = lax.broadcasted_iota(jnp.int32, (1, stats_ref.shape[-1]), 1)
    stats_ref[...] += jnp.where(lane == 0, s, 0.0) + jnp.where(lane == 1, ss, 0.0)


def _stream2_kernel(x_ref, stats_ref, h_ref, g2_ref, b2_ref, w2_ref, bias2_ref,
                    o_ref, acc_ref,
                    *, h_true, approx_gelu):
    """Pass 2: LN2 + GELU per hidden chunk, accumulate Linear2, add residual."""
    j = pl.program_id(1)

    @pl.when(j == 0)
    def _():
        acc_ref[...] = jnp.zeros_like(acc_ref)

    stats = stats_ref[...]
    inv_h = 1.0 / h_true
    mu = stats[:, 0:1] * inv_h
    var = jnp.maximum(stats[:, 1:2] * inv_h - mu * mu, 0.0)
    rstd = lax.rsqrt(var + LN_EPS)

    h = h_ref[...].astype(jnp.float32)
    h = (h - mu) * rstd * g2_ref[...] + b2_ref[...]
    h = _gelu(h, approx_gelu)
    # Dropout(p=0.1): identity in eval mode.

    acc_ref[...] += jnp.dot(h.astype(jnp.bfloat16), w2_ref[...],
                            preferred_element_type=jnp.float32)

    @pl.when(j == pl.num_programs(1) - 1)
    def _():
        o_ref[...] = (acc_ref[...] + bias2_ref[...]
                      + x_ref[...].astype(jnp.float32)).astype(o_ref.dtype)


# --------------------------------- wrappers -----------------------------------

def prepare_params(params):
    """One-time pad/cast of parameters to lane-dense TPU layouts.

    Hoisted out of the per-call path (call once, reuse across invocations)."""
    dim, hidden = params["w1"].shape
    dp = _round_up(dim, 128)
    hp = _round_up(hidden, 128)
    f32, bf16 = jnp.float32, jnp.bfloat16

    def vec(v, size):
        v = jnp.asarray(v, f32).reshape(1, -1)
        if v.shape[1] == size:
            return v
        return jnp.zeros((1, size), f32).at[:, :v.shape[1]].set(v)

    def mat(w, r, c):
        w = jnp.asarray(w, bf16)
        if w.shape == (r, c):
            return w
        return jnp.zeros((r, c), bf16).at[:w.shape[0], :w.shape[1]].set(w)

    return {
        "_prepared": True, "dim": dim, "hidden": hidden, "dp": dp, "hp": hp,
        "g1": vec(params["ln1_gamma"], dp), "b1": vec(params["ln1_beta"], dp),
        "w1": mat(params["w1"], dp, hp),    "bias1": vec(params["b1"], hp),
        "g2": vec(params["ln2_gamma"], hp), "b2": vec(params["ln2_beta"], hp),
        "w2": mat(params["w2"], hp, dp),    "bias2": vec(params["b2"], dp),
    }


def _stream_forward(x2d, p, tm, approx_gelu, budget):
    """Hidden-dim weight-streaming path (large D/H): two BlockSpec-pipelined calls."""
    dim, hidden, dp, hp = p["dim"], p["hidden"], p["dp"], p["hp"]
    n = x2d.shape[0]

    tm_eff = _pick_row_tile(n, 256 if tm is None else tm)
    n_pad = _round_up(n, tm_eff)

    th = 128
    for c in (512, 256):
        if hp % c == 0:
            th = c
            break

    x_p = x2d if (n_pad == n and dp == dim) else (
        jnp.zeros((n_pad, dp), x2d.dtype).at[:n, :dim].set(x2d))

    grid = (n_pad // tm_eff, hp // th)
    cparams = pltpu.CompilerParams(dimension_semantics=("parallel", "arbitrary"),
                                   vmem_limit_bytes=budget)
    k1 = functools.partial(_stream1_kernel, d_true=dim, approx_gelu=approx_gelu)
    k2 = functools.partial(_stream2_kernel, h_true=hidden, approx_gelu=approx_gelu)

    def run(single_buffer):
        def const_spec(shape):
            if single_buffer:
                return pl.BlockSpec(shape, lambda i, j: (0, 0),
                                    pipeline_mode=pl.Buffered(1))
            return pl.BlockSpec(shape, lambda i, j: (0, 0))

        # Pass 1: h = GELU(LN1(x)) @ w1 + b1, per H-chunk; LN2 sum / sumsq.
        h_out, stats = pl.pallas_call(
            k1,
            out_shape=(jax.ShapeDtypeStruct((n_pad, hp), jnp.bfloat16),
                       jax.ShapeDtypeStruct((n_pad, 128), jnp.float32)),
            grid=grid,
            in_specs=[
                pl.BlockSpec((tm_eff, dp), lambda i, j: (i, 0)),   # x rows
                const_spec((1, dp)),                               # ln1 gamma
                const_spec((1, dp)),                               # ln1 beta
                pl.BlockSpec((dp, th), lambda i, j: (0, j)),       # w1 chunk
                pl.BlockSpec((1, th), lambda i, j: (0, j)),        # b1 chunk
            ],
            out_specs=(pl.BlockSpec((tm_eff, th), lambda i, j: (i, j)),
                       pl.BlockSpec((tm_eff, 128), lambda i, j: (i, 0))),
            scratch_shapes=[pltpu.VMEM((tm_eff, dp), jnp.bfloat16)],
            compiler_params=cparams,
        )(x_p, p["g1"], p["b1"], p["w1"], p["bias1"])

        # Pass 2: LN2 + GELU per H-chunk, accumulate Linear2, add residual.
        return pl.pallas_call(
            k2,
            out_shape=jax.ShapeDtypeStruct((n_pad, dp), x2d.dtype),
            grid=grid,
            in_specs=[
                pl.BlockSpec((tm_eff, dp), lambda i, j: (i, 0)),    # x (residual)
                pl.BlockSpec((tm_eff, 128), lambda i, j: (i, 0)),   # LN2 stats
                pl.BlockSpec((tm_eff, th), lambda i, j: (i, j)),    # h chunk
                pl.BlockSpec((1, th), lambda i, j: (0, j)),         # ln2 gamma chunk
                pl.BlockSpec((1, th), lambda i, j: (0, j)),         # ln2 beta chunk
                pl.BlockSpec((th, dp), lambda i, j: (j, 0)),        # w2 chunk
                const_spec((1, dp)),                                # b2
            ],
            out_specs=pl.BlockSpec((tm_eff, dp), lambda i, j: (i, 0)),
            scratch_shapes=[pltpu.VMEM((tm_eff, dp), jnp.float32)],
            compiler_params=cparams,
        )(x_p, stats, h_out, p["g2"], p["b2"], p["w2"], p["bias2"])

    try:
        return run(single_buffer=True)
    except Exception:       # older JAX without BlockSpec.pipeline_mode support
        return run(single_buffer=False)


def residual_block(x, params, *, tm=None, approx_gelu=False, force_stream=False):
    """x: (..., dim). params: raw init_params dict or prepare_params() output."""
    p = params if params.get("_prepared") else prepare_params(params)
    dim, hidden, dp, hp = p["dim"], p["hidden"], p["dp"], p["hp"]

    orig_shape = x.shape
    x2d = x.reshape(-1, dim)
    n = x2d.shape[0]
    itemsize = x2d.dtype.itemsize

    # ---- per-chip VMEM budget (leave slack for Mosaic internal scratch) ----
    budget = int(_vmem_capacity_bytes() * 7 // 8)

    weight_bytes = 2 * dp * hp * 2            # w1 + w2, bf16, single-buffered
    vec_bytes = (3 * dp + 3 * hp) * 8 * 4     # 1-row params, sublane padded

    def fused_tile_bytes(tm_):
        io = 2 * 2 * tm_ * dp * itemsize      # double-buffered in + out tiles
        interm = 3 * tm_ * max(dp, hp) * 4    # f32 temporaries
        return io + interm

    use_stream = force_stream or (
        weight_bytes + vec_bytes + fused_tile_bytes(128) > budget)

    if use_stream:
        out2d = _stream_forward(x2d, p, tm, approx_gelu, budget)
        return out2d[:n, :dim].reshape(orig_shape)

    # ---- fused path: row tile as big as the budget allows ----
    if tm is None:
        candidates = ([1024] if max(dp, hp) <= 1024 else []) + [512, 256, 128]
        tm_target = 128
        for c in candidates:
            if weight_bytes + vec_bytes + fused_tile_bytes(c) <= budget:
                tm_target = c
                break
    else:
        tm_target = tm
    tm_eff = _pick_row_tile(n, tm_target)
    n_pad = _round_up(n, tm_eff)

    x_p = x2d if (n_pad == n and dp == dim) else (
        jnp.zeros((n_pad, dp), x2d.dtype).at[:n, :dim].set(x2d))

    est = weight_bytes + vec_bytes + fused_tile_bytes(tm_eff)
    vmem_limit = int(min(max(est + est // 4, 32 * 1024 * 1024), budget))

    kernel = functools.partial(_fused_kernel, d_true=dim, h_true=hidden,
                               approx_gelu=approx_gelu)

    def run(single_buffer):
        def const_spec(shape):
            if single_buffer:
                return pl.BlockSpec(shape, lambda i: (0, 0),
                                    pipeline_mode=pl.Buffered(1))
            return pl.BlockSpec(shape, lambda i: (0, 0))

        return pl.pallas_call(
            kernel,
            out_shape=jax.ShapeDtypeStruct((n_pad, dp), x.dtype),
            grid=(n_pad // tm_eff,),
            in_specs=[
                pl.BlockSpec((tm_eff, dp), lambda i: (i, 0)),   # x row tile
                const_spec((1, dp)),      # ln1 gamma
                const_spec((1, dp)),      # ln1 beta
                const_spec((dp, hp)),     # w1 (bf16)
                const_spec((1, hp)),      # b1
                const_spec((1, hp)),      # ln2 gamma
                const_spec((1, hp)),      # ln2 beta
                const_spec((hp, dp)),     # w2 (bf16)
                const_spec((1, dp)),      # b2
            ],
            out_specs=pl.BlockSpec((tm_eff, dp), lambda i: (i, 0)),
            compiler_params=pltpu.CompilerParams(
                dimension_semantics=("parallel",),
                vmem_limit_bytes=vmem_limit),
        )(x_p, p["g1"], p["b1"], p["w1"], p["bias1"],
          p["g2"], p["b2"], p["w2"], p["bias2"])

    try:
        out2d = run(single_buffer=True)
    except Exception:       # older JAX without BlockSpec.pipeline_mode support
        out2d = run(single_buffer=False)

    return out2d[:n, :dim].reshape(orig_shape)


# --------------------------- params / reference -------------------------------

def init_params(key, dim, hidden_dim=None):
    if hidden_dim is None:
        hidden_dim = dim
    k1, k2, k3, k4 = jax.random.split(key, 4)
    # nn.Linear default init: U(-1/sqrt(fan_in), 1/sqrt(fan_in)); LayerNorm: 1/0.
    lim1 = 1.0 / jnp.sqrt(dim)
    lim2 = 1.0 / jnp.sqrt(hidden_dim)
    return {
        "ln1_gamma": jnp.ones((dim,), jnp.float32),
        "ln1_beta": jnp.zeros((dim,), jnp.float32),
        # stored (in, out) == PyTorch weight.T
        "w1": jax.random.uniform(k1, (dim, hidden_dim), jnp.float32, -lim1, lim1),
        "b1": jax.random.uniform(k2, (hidden_dim,), jnp.float32, -lim1, lim1),
        "ln2_gamma": jnp.ones((hidden_dim,), jnp.float32),
        "ln2_beta": jnp.zeros((hidden_dim,), jnp.float32),
        "w2": jax.random.uniform(k3, (hidden_dim, dim), jnp.float32, -lim2, lim2),
        "b2": jax.random.uniform(k4, (dim,), jnp.float32, -lim2, lim2),
    }


def _reference(x, p):
    # pure-JAX f32 reference of the same forward (eval-mode dropout)
    def ln(v, g, b):
        mu = jnp.mean(v, -1, keepdims=True)
        var = jnp.mean((v - mu) ** 2, -1, keepdims=True)
        return (v - mu) * lax.rsqrt(var + LN_EPS) * g + b

    h = _gelu(ln(x, p["ln1_gamma"], p["ln1_beta"]), False)
    h = h @ p["w1"] + p["b1"]
    h = _gelu(ln(h, p["ln2_gamma"], p["ln2_beta"]), False)
    h = h @ p["w2"] + p["b2"]
    return h + x


if __name__ == "__main__":
    key = jax.random.PRNGKey(0)
    kx, kp = jax.random.split(key)

    batch, seq, dim, hidden = 2, 8, 32, 64
    x = jax.random.normal(kx, (batch, seq, dim), jnp.float32)
    params = init_params(kp, dim, hidden)
    prepped = prepare_params(params)        # one-time pad/cast (per-call path skips it)

    ref = _reference(x, params)

    # fused (weights-resident) path
    out = jax.block_until_ready(residual_block(x, prepped))
    assert out.shape == x.shape
    # bf16 MXU matmuls -> loosened tolerance vs the f32 reference
    assert jnp.allclose(out, ref, atol=2e-2, rtol=2e-2), "fused path mismatch"

    # hidden-dim weight-streaming path (forced here to exercise it at tiny shapes)
    out_s = jax.block_until_ready(residual_block(x, prepped, force_stream=True))
    assert jnp.allclose(out_s, ref, atol=2e-2, rtol=2e-2), "streaming path mismatch"

    # tanh-approximate GELU (EUP) variant
    out_a = jax.block_until_ready(residual_block(x, prepped, approx_gelu=True))
    assert jnp.allclose(out_a, ref, atol=5e-2, rtol=5e-2), "approx-GELU path mismatch"

    print("KERNEL_OK")
</pallas_src>

<mosaic_0001>
module attributes {stable_mosaic.version = 11 : i64} {
  func.func @_fused_kernel(%arg0: i32, %arg1: memref<16x128xf32, #tpu.memory_space<vmem>>, %arg2: memref<1x128xf32, #tpu.memory_space<vmem>>, %arg3: memref<1x128xf32, #tpu.memory_space<vmem>>, %arg4: memref<128x128xbf16, #tpu.memory_space<vmem>>, %arg5: memref<1x128xf32, #tpu.memory_space<vmem>>, %arg6: memref<1x128xf32, #tpu.memory_space<vmem>>, %arg7: memref<1x128xf32, #tpu.memory_space<vmem>>, %arg8: memref<128x128xbf16, #tpu.memory_space<vmem>>, %arg9: memref<1x128xf32, #tpu.memory_space<vmem>>, %arg10: memref<16x128xf32, #tpu.memory_space<vmem>>) attributes {dimension_semantics = [#tpu.dimension_semantics<parallel>], iteration_bounds = array<i64: 1>, scalar_prefetch = 0 : i64, scratch_operands = 0 : i64, tpu.core_type = #tpu.core_type<tc>, window_params = [{transform_indices = @transform_0, window_bounds = array<i64: 16, 128>}, {pipeline_mode = #tpu.pipeline_mode<synchronous>, transform_indices = @transform_1, window_bounds = array<i64: 1, 128>}, {pipeline_mode = #tpu.pipeline_mode<synchronous>, transform_indices = @transform_2, window_bounds = array<i64: 1, 128>}, {pipeline_mode = #tpu.pipeline_mode<synchronous>, transform_indices = @transform_3, window_bounds = array<i64: 128, 128>}, {pipeline_mode = #tpu.pipeline_mode<synchronous>, transform_indices = @transform_4, window_bounds = array<i64: 1, 128>}, {pipeline_mode = #tpu.pipeline_mode<synchronous>, transform_indices = @transform_5, window_bounds = array<i64: 1, 128>}, {pipeline_mode = #tpu.pipeline_mode<synchronous>, transform_indices = @transform_6, window_bounds = array<i64: 1, 128>}, {pipeline_mode = #tpu.pipeline_mode<synchronous>, transform_indices = @transform_7, window_bounds = array<i64: 128, 128>}, {pipeline_mode = #tpu.pipeline_mode<synchronous>, transform_indices = @transform_8, window_bounds = array<i64: 1, 128>}, {transform_indices = @transform_9, window_bounds = array<i64: 16, 128>}]} {
    %c0 = arith.constant 0 : index
    %c0_0 = arith.constant 0 : index
    %0 = vector.load %arg1[%c0, %c0_0] : memref<16x128xf32, #tpu.memory_space<vmem>>, vector<16x128xf32>
    %cst = arith.constant dense<0.000000e+00> : vector<16xf32>
    %1 = vector.multi_reduction <add>, %0, %cst [1] : vector<16x128xf32> to vector<16xf32>
    %2 = vector.shape_cast %1 : vector<16xf32> to vector<16x1xf32>
    %cst_1 = arith.constant 3.125000e-02 : f32
    %3 = vector.broadcast %cst_1 : f32 to vector<16x1xf32>
    %4 = arith.mulf %2, %3 : vector<16x1xf32>
    %5 = arith.mulf %0, %0 : vector<16x128xf32>
    %cst_2 = arith.constant dense<0.000000e+00> : vector<16xf32>
    %6 = vector.multi_reduction <add>, %5, %cst_2 [1] : vector<16x128xf32> to vector<16xf32>
    %7 = vector.shape_cast %6 : vector<16xf32> to vector<16x1xf32>
    %cst_3 = arith.constant 3.125000e-02 : f32
    %8 = vector.broadcast %cst_3 : f32 to vector<16x1xf32>
    %9 = arith.mulf %7, %8 : vector<16x1xf32>
    %10 = arith.mulf %4, %4 : vector<16x1xf32>
    %11 = arith.subf %9, %10 : vector<16x1xf32>
    %cst_4 = arith.constant 0.000000e+00 : f32
    %12 = vector.broadcast %cst_4 : f32 to vector<16x1xf32>
    %13 = arith.maximumf %11, %12 : vector<16x1xf32>
    %14 = vector.broadcast %4 : vector<16x1xf32> to vector<16x128xf32>
    %15 = arith.subf %0, %14 : vector<16x128xf32>
    %cst_5 = arith.constant 9.99999974E-6 : f32
    %16 = vector.broadcast %cst_5 : f32 to vector<16x1xf32>
    %17 = arith.addf %13, %16 : vector<16x1xf32>
    %18 = math.rsqrt %17 : vector<16x1xf32>
    %19 = vector.broadcast %18 : vector<16x1xf32> to vector<16x128xf32>
    %20 = arith.mulf %15, %19 : vector<16x128xf32>
    %c0_6 = arith.constant 0 : index
    %c0_7 = arith.constant 0 : index
    %21 = vector.load %arg2[%c0_6, %c0_7] : memref<1x128xf32, #tpu.memory_space<vmem>>, vector<1x128xf32>
    %22 = vector.broadcast %21 : vector<1x128xf32> to vector<16x128xf32>
    %23 = arith.mulf %20, %22 : vector<16x128xf32>
    %c0_8 = arith.constant 0 : index
    %c0_9 = arith.constant 0 : index
    %24 = vector.load %arg3[%c0_8, %c0_9] : memref<1x128xf32, #tpu.memory_space<vmem>>, vector<1x128xf32>
    %25 = vector.broadcast %24 : vector<1x128xf32> to vector<16x128xf32>
    %26 = arith.addf %23, %25 : vector<16x128xf32>
    %cst_10 = arith.constant 5.000000e-01 : f32
    %27 = vector.broadcast %cst_10 : f32 to vector<16x128xf32>
    %28 = arith.mulf %27, %26 : vector<16x128xf32>
    %cst_11 = arith.constant 0.707106769 : f32
    %29 = vector.broadcast %cst_11 : f32 to vector<16x128xf32>
    %30 = arith.mulf %26, %29 : vector<16x128xf32>
    %31 = math.erf %30 : vector<16x128xf32>
    %cst_12 = arith.constant 1.000000e+00 : f32
    %32 = vector.broadcast %cst_12 : f32 to vector<16x128xf32>
    %33 = arith.addf %32, %31 : vector<16x128xf32>
    %34 = arith.mulf %28, %33 : vector<16x128xf32>
    %35 = arith.truncf %34 : vector<16x128xf32> to vector<16x128xbf16>
    %c0_13 = arith.constant 0 : index
    %c0_14 = arith.constant 0 : index
    %36 = vector.load %arg4[%c0_13, %c0_14] : memref<128x128xbf16, #tpu.memory_space<vmem>>, vector<128x128xbf16>
    %cst_15 = arith.constant dense<0.000000e+00> : vector<16x128xf32>
    %37 = tpu.matmul %35, %36, %cst_15 {dimension_numbers = #tpu.dot_dimension_numbers<[1], [0], [0], [1], [0, 0, 1, 1], [], []>} : vector<16x128xbf16>, vector<128x128xbf16>, vector<16x128xf32> -> vector<16x128xf32>
    %c0_16 = arith.constant 0 : index
    %c0_17 = arith.constant 0 : index
    %38 = vector.load %arg5[%c0_16, %c0_17] : memref<1x128xf32, #tpu.memory_space<vmem>>, vector<1x128xf32>
    %39 = vector.broadcast %38 : vector<1x128xf32> to vector<16x128xf32>
    %40 = arith.addf %37, %39 : vector<16x128xf32>
    %cst_18 = arith.constant dense<0.000000e+00> : vector<16xf32>
    %41 = vector.multi_reduction <add>, %40, %cst_18 [1] : vector<16x128xf32> to vector<16xf32>
    %42 = vector.shape_cast %41 : vector<16xf32> to vector<16x1xf32>
    %cst_19 = arith.constant 1.562500e-02 : f32
    %43 = vector.broadcast %cst_19 : f32 to vector<16x1xf32>
    %44 = arith.mulf %42, %43 : vector<16x1xf32>
    %45 = arith.mulf %40, %40 : vector<16x128xf32>
    %cst_20 = arith.constant dense<0.000000e+00> : vector<16xf32>
    %46 = vector.multi_reduction <add>, %45, %cst_20 [1] : vector<16x128xf32> to vector<16xf32>
    %47 = vector.shape_cast %46 : vector<16xf32> to vector<16x1xf32>
    %cst_21 = arith.constant 1.562500e-02 : f32
    %48 = vector.broadcast %cst_21 : f32 to vector<16x1xf32>
    %49 = arith.mulf %47, %48 : vector<16x1xf32>
    %50 = arith.mulf %44, %44 : vector<16x1xf32>
    %51 = arith.subf %49, %50 : vector<16x1xf32>
    %cst_22 = arith.constant 0.000000e+00 : f32
    %52 = vector.broadcast %cst_22 : f32 to vector<16x1xf32>
    %53 = arith.maximumf %51, %52 : vector<16x1xf32>
    %54 = vector.broadcast %44 : vector<16x1xf32> to vector<16x128xf32>
    %55 = arith.subf %40, %54 : vector<16x128xf32>
    %cst_23 = arith.constant 9.99999974E-6 : f32
    %56 = vector.broadcast %cst_23 : f32 to vector<16x1xf32>
    %57 = arith.addf %53, %56 : vector<16x1xf32>
    %58 = math.rsqrt %57 : vector<16x1xf32>
    %59 = vector.broadcast %58 : vector<16x1xf32> to vector<16x128xf32>
    %60 = arith.mulf %55, %59 : vector<16x128xf32>
    %c0_24 = arith.constant 0 : index
    %c0_25 = arith.constant 0 : index
    %61 = vector.load %arg6[%c0_24, %c0_25] : memref<1x128xf32, #tpu.memory_space<vmem>>, vector<1x128xf32>
    %62 = vector.broadcast %61 : vector<1x128xf32> to vector<16x128xf32>
    %63 = arith.mulf %60, %62 : vector<16x128xf32>
    %c0_26 = arith.constant 0 : index
    %c0_27 = arith.constant 0 : index
    %64 = vector.load %arg7[%c0_26, %c0_27] : memref<1x128xf32, #tpu.memory_space<vmem>>, vector<1x128xf32>
    %65 = vector.broadcast %64 : vector<1x128xf32> to vector<16x128xf32>
    %66 = arith.addf %63, %65 : vector<16x128xf32>
    %cst_28 = arith.constant 5.000000e-01 : f32
    %67 = vector.broadcast %cst_28 : f32 to vector<16x128xf32>
    %68 = arith.mulf %67, %66 : vector<16x128xf32>
    %cst_29 = arith.constant 0.707106769 : f32
    %69 = vector.broadcast %cst_29 : f32 to vector<16x128xf32>
    %70 = arith.mulf %66, %69 : vector<16x128xf32>
    %71 = math.erf %70 : vector<16x128xf32>
    %cst_30 = arith.constant 1.000000e+00 : f32
    %72 = vector.broadcast %cst_30 : f32 to vector<16x128xf32>
    %73 = arith.addf %72, %71 : vector<16x128xf32>
    %74 = arith.mulf %68, %73 : vector<16x128xf32>
    %75 = arith.truncf %74 : vector<16x128xf32> to vector<16x128xbf16>
    %c0_31 = arith.constant 0 : index
    %c0_32 = arith.constant 0 : index
    %76 = vector.load %arg8[%c0_31, %c0_32] : memref<128x128xbf16, #tpu.memory_space<vmem>>, vector<128x128xbf16>
    %cst_33 = arith.constant dense<0.000000e+00> : vector<16x128xf32>
    %77 = tpu.matmul %75, %76, %cst_33 {dimension_numbers = #tpu.dot_dimension_numbers<[1], [0], [0], [1], [0, 0, 1, 1], [], []>} : vector<16x128xbf16>, vector<128x128xbf16>, vector<16x128xf32> -> vector<16x128xf32>
    %c0_34 = arith.constant 0 : index
    %c0_35 = arith.constant 0 : index
    %78 = vector.load %arg9[%c0_34, %c0_35] : memref<1x128xf32, #tpu.memory_space<vmem>>, vector<1x128xf32>
    %79 = vector.broadcast %78 : vector<1x128xf32> to vector<16x128xf32>
    %80 = arith.addf %77, %79 : vector<16x128xf32>
    %c0_36 = arith.constant 0 : index
    %c0_37 = arith.constant 0 : index
    %81 = vector.load %arg1[%c0_36, %c0_37] : memref<16x128xf32, #tpu.memory_space<vmem>>, vector<16x128xf32>
    %82 = arith.addf %80, %81 : vector<16x128xf32>
    %c0_38 = arith.constant 0 : index
    %c0_39 = arith.constant 0 : index
    %83 = vector.load %arg10[%c0_38, %c0_39] : memref<16x128xf32, #tpu.memory_space<vmem>>, vector<16x128xf32>
    tpu.vector_store %arg10[%c0_38, %c0_39], %82 {strides = array<i32>} : memref<16x128xf32, #tpu.memory_space<vmem>>, vector<16x128xf32>,
    return
  }
  func.func @transform_0(%arg0: i32) -> (i32, i32) {
    %c0_i32 = arith.constant 0 : i32
    %c0_i32_0 = arith.constant 0 : i32
    return %arg0, %c0_i32 : i32, i32
  }
  func.func @transform_1(%arg0: i32) -> (i32, i32) {
    %c0_i32 = arith.constant 0 : i32
    %c0_i32_0 = arith.constant 0 : i32
    %c0_i32_1 = arith.constant 0 : i32
    return %c0_i32, %c0_i32_0 : i32, i32
  }
  func.func @transform_2(%arg0: i32) -> (i32, i32) {
    %c0_i32 = arith.constant 0 : i32
    %c0_i32_0 = arith.constant 0 : i32
    %c0_i32_1 = arith.constant 0 : i32
    return %c0_i32, %c0_i32_0 : i32, i32
  }
  func.func @transform_3(%arg0: i32) -> (i32, i32) {
    %c0_i32 = arith.constant 0 : i32
    %c0_i32_0 = arith.constant 0 : i32
    %c0_i32_1 = arith.constant 0 : i32
    return %c0_i32, %c0_i32_0 : i32, i32
  }
  func.func @transform_4(%arg0: i32) -> (i32, i32) {
    %c0_i32 = arith.constant 0 : i32
    %c0_i32_0 = arith.constant 0 : i32
    %c0_i32_1 = arith.constant 0 : i32
    return %c0_i32, %c0_i32_0 : i32, i32
  }
  func.func @transform_5(%arg0: i32) -> (i32, i32) {
    %c0_i32 = arith.constant 0 : i32
    %c0_i32_0 = arith.constant 0 : i32
    %c0_i32_1 = arith.constant 0 : i32
    return %c0_i32, %c0_i32_0 : i32, i32
  }
  func.func @transform_6(%arg0: i32) -> (i32, i32) {
    %c0_i32 = arith.constant 0 : i32
    %c0_i32_0 = arith.constant 0 : i32
    %c0_i32_1 = arith.constant 0 : i32
    return %c0_i32, %c0_i32_0 : i32, i32
  }
  func.func @transform_7(%arg0: i32) -> (i32, i32) {
    %c0_i32 = arith.constant 0 : i32
    %c0_i32_0 = arith.constant 0 : i32
    %c0_i32_1 = arith.constant 0 : i32
    return %c0_i32, %c0_i32_0 : i32, i32
  }
  func.func @transform_8(%arg0: i32) -> (i32, i32) {
    %c0_i32 = arith.constant 0 : i32
    %c0_i32_0 = arith.constant 0 : i32
    %c0_i32_1 = arith.constant 0 : i32
    return %c0_i32, %c0_i32_0 : i32, i32
  }
  func.func @transform_9(%arg0: i32) -> (i32, i32) {
    %c0_i32 = arith.constant 0 : i32
    %c0_i32_0 = arith.constant 0 : i32
    return %arg0, %c0_i32 : i32, i32
  }
}

module attributes {stable_mosaic.version = 11 : i64} {
  func.func @_fused_kernel(%arg0: i32, %arg1: memref<16x128xf32, #tpu.memory_space<vmem>>, %arg2: memref<1x128xf32, #tpu.memory_space<vmem>>, %arg3: memref<1x128xf32, #tpu.memory_space<vmem>>, %arg4: memref<128x128xbf16, #tpu.memory_space<vmem>>, %arg5: memref<1x128xf32, #tpu.memory_space<vmem>>, %arg6: memref<1x128xf32, #tpu.memory_space<vmem>>, %arg7: memref<1x128xf32, #tpu.memory_space<vmem>>, %arg8: memref<128x128xbf16, #tpu.memory_space<vmem>>, %arg9: memref<1x128xf32, #tpu.memory_space<vmem>>, %arg10: memref<16x128xf32, #tpu.memory_space<vmem>>) attributes {dimension_semantics = [#tpu.dimension_semantics<parallel>], iteration_bounds = array<i64: 1>, scalar_prefetch = 0 : i64, scratch_operands = 0 : i64, tpu.core_type = #tpu.core_type<tc>, window_params = [{transform_indices = @transform_0, window_bounds = array<i64: 16, 128>}, {pipeline_mode = #tpu.pipeline_mode<synchronous>, transform_indices = @transform_1, window_bounds = array<i64: 1, 128>}, {pipeline_mode = #tpu.pipeline_mode<synchronous>, transform_indices = @transform_2, window_bounds = array<i64: 1, 128>}, {pipeline_mode = #tpu.pipeline_mode<synchronous>, transform_indices = @transform_3, window_bounds = array<i64: 128, 128>}, {pipeline_mode = #tpu.pipeline_mode<synchronous>, transform_indices = @transform_4, window_bounds = array<i64: 1, 128>}, {pipeline_mode = #tpu.pipeline_mode<synchronous>, transform_indices = @transform_5, window_bounds = array<i64: 1, 128>}, {pipeline_mode = #tpu.pipeline_mode<synchronous>, transform_indices = @transform_6, window_bounds = array<i64: 1, 128>}, {pipeline_mode = #tpu.pipeline_mode<synchronous>, transform_indices = @transform_7, window_bounds = array<i64: 128, 128>}, {pipeline_mode = #tpu.pipeline_mode<synchronous>, transform_indices = @transform_8, window_bounds = array<i64: 1, 128>}, {transform_indices = @transform_9, window_bounds = array<i64: 16, 128>}]} {
    %c0 = arith.constant 0 : index
    %c0_0 = arith.constant 0 : index
    %0 = vector.load %arg1[%c0, %c0_0] : memref<16x128xf32, #tpu.memory_space<vmem>>, vector<16x128xf32>
    %cst = arith.constant dense<0.000000e+00> : vector<16xf32>
    %1 = vector.multi_reduction <add>, %0, %cst [1] : vector<16x128xf32> to vector<16xf32>
    %2 = vector.shape_cast %1 : vector<16xf32> to vector<16x1xf32>
    %cst_1 = arith.constant 3.125000e-02 : f32
    %3 = vector.broadcast %cst_1 : f32 to vector<16x1xf32>
    %4 = arith.mulf %2, %3 : vector<16x1xf32>
    %5 = arith.mulf %0, %0 : vector<16x128xf32>
    %cst_2 = arith.constant dense<0.000000e+00> : vector<16xf32>
    %6 = vector.multi_reduction <add>, %5, %cst_2 [1] : vector<16x128xf32> to vector<16xf32>
    %7 = vector.shape_cast %6 : vector<16xf32> to vector<16x1xf32>
    %cst_3 = arith.constant 3.125000e-02 : f32
    %8 = vector.broadcast %cst_3 : f32 to vector<16x1xf32>
    %9 = arith.mulf %7, %8 : vector<16x1xf32>
    %10 = arith.mulf %4, %4 : vector<16x1xf32>
    %11 = arith.subf %9, %10 : vector<16x1xf32>
    %cst_4 = arith.constant 0.000000e+00 : f32
    %12 = vector.broadcast %cst_4 : f32 to vector<16x1xf32>
    %13 = arith.maximumf %11, %12 : vector<16x1xf32>
    %14 = vector.broadcast %4 : vector<16x1xf32> to vector<16x128xf32>
    %15 = arith.subf %0, %14 : vector<16x128xf32>
    %cst_5 = arith.constant 9.99999974E-6 : f32
    %16 = vector.broadcast %cst_5 : f32 to vector<16x1xf32>
    %17 = arith.addf %13, %16 : vector<16x1xf32>
    %18 = math.rsqrt %17 : vector<16x1xf32>
    %19 = vector.broadcast %18 : vector<16x1xf32> to vector<16x128xf32>
    %20 = arith.mulf %15, %19 : vector<16x128xf32>
    %c0_6 = arith.constant 0 : index
    %c0_7 = arith.constant 0 : index
    %21 = vector.load %arg2[%c0_6, %c0_7] : memref<1x128xf32, #tpu.memory_space<vmem>>, vector<1x128xf32>
    %22 = vector.broadcast %21 : vector<1x128xf32> to vector<16x128xf32>
    %23 = arith.mulf %20, %22 : vector<16x128xf32>
    %c0_8 = arith.constant 0 : index
    %c0_9 = arith.constant 0 : index
    %24 = vector.load %arg3[%c0_8, %c0_9] : memref<1x128xf32, #tpu.memory_space<vmem>>, vector<1x128xf32>
    %25 = vector.broadcast %24 : vector<1x128xf32> to vector<16x128xf32>
    %26 = arith.addf %23, %25 : vector<16x128xf32>
    %cst_10 = arith.constant 5.000000e-01 : f32
    %27 = vector.broadcast %cst_10 : f32 to vector<16x128xf32>
    %28 = arith.mulf %27, %26 : vector<16x128xf32>
    %cst_11 = arith.constant 0.707106769 : f32
    %29 = vector.broadcast %cst_11 : f32 to vector<16x128xf32>
    %30 = arith.mulf %26, %29 : vector<16x128xf32>
    %31 = math.erf %30 : vector<16x128xf32>
    %cst_12 = arith.constant 1.000000e+00 : f32
    %32 = vector.broadcast %cst_12 : f32 to vector<16x128xf32>
    %33 = arith.addf %32, %31 : vector<16x128xf32>
    %34 = arith.mulf %28, %33 : vector<16x128xf32>
    %35 = arith.truncf %34 : vector<16x128xf32> to vector<16x128xbf16>
    %c0_13 = arith.constant 0 : index
    %c0_14 = arith.constant 0 : index
    %36 = vector.load %arg4[%c0_13, %c0_14] : memref<128x128xbf16, #tpu.memory_space<vmem>>, vector<128x128xbf16>
    %cst_15 = arith.constant dense<0.000000e+00> : vector<16x128xf32>
    %37 = tpu.matmul %35, %36, %cst_15 {dimension_numbers = #tpu.dot_dimension_numbers<[1], [0], [0], [1], [0, 0, 1, 1], [], []>} : vector<16x128xbf16>, vector<128x128xbf16>, vector<16x128xf32> -> vector<16x128xf32>
    %c0_16 = arith.constant 0 : index
    %c0_17 = arith.constant 0 : index
    %38 = vector.load %arg5[%c0_16, %c0_17] : memref<1x128xf32, #tpu.memory_space<vmem>>, vector<1x128xf32>
    %39 = vector.broadcast %38 : vector<1x128xf32> to vector<16x128xf32>
    %40 = arith.addf %37, %39 : vector<16x128xf32>
    %cst_18 = arith.constant dense<0.000000e+00> : vector<16xf32>
    %41 = vector.multi_reduction <add>, %40, %cst_18 [1] : vector<16x128xf32> to vector<16xf32>
    %42 = vector.shape_cast %41 : vector<16xf32> to vector<16x1xf32>
    %cst_19 = arith.constant 1.562500e-02 : f32
    %43 = vector.broadcast %cst_19 : f32 to vector<16x1xf32>
    %44 = arith.mulf %42, %43 : vector<16x1xf32>
    %45 = arith.mulf %40, %40 : vector<16x128xf32>
    %cst_20 = arith.constant dense<0.000000e+00> : vector<16xf32>
    %46 = vector.multi_reduction <add>, %45, %cst_20 [1] : vector<16x128xf32> to vector<16xf32>
    %47 = vector.shape_cast %46 : vector<16xf32> to vector<16x1xf32>
    %cst_21 = arith.constant 1.562500e-02 : f32
    %48 = vector.broadcast %cst_21 : f32 to vector<16x1xf32>
    %49 = arith.mulf %47, %48 : vector<16x1xf32>
    %50 = arith.mulf %44, %44 : vector<16x1xf32>
    %51 = arith.subf %49, %50 : vector<16x1xf32>
    %cst_22 = arith.constant 0.000000e+00 : f32
    %52 = vector.broadcast %cst_22 : f32 to vector<16x1xf32>
    %53 = arith.maximumf %51, %52 : vector<16x1xf32>
    %54 = vector.broadcast %44 : vector<16x1xf32> to vector<16x128xf32>
    %55 = arith.subf %40, %54 : vector<16x128xf32>
    %cst_23 = arith.constant 9.99999974E-6 : f32
    %56 = vector.broadcast %cst_23 : f32 to vector<16x1xf32>
    %57 = arith.addf %53, %56 : vector<16x1xf32>
    %58 = math.rsqrt %57 : vector<16x1xf32>
    %59 = vector.broadcast %58 : vector<16x1xf32> to vector<16x128xf32>
    %60 = arith.mulf %55, %59 : vector<16x128xf32>
    %c0_24 = arith.constant 0 : index
    %c0_25 = arith.constant 0 : index
    %61 = vector.load %arg6[%c0_24, %c0_25] : memref<1x128xf32, #tpu.memory_space<vmem>>, vector<1x128xf32>
    %62 = vector.broadcast %61 : vector<1x128xf32> to vector<16x128xf32>
    %63 = arith.mulf %60, %62 : vector<16x128xf32>
    %c0_26 = arith.constant 0 : index
    %c0_27 = arith.constant 0 : index
    %64 = vector.load %arg7[%c0_26, %c0_27] : memref<1x128xf32, #tpu.memory_space<vmem>>, vector<1x128xf32>
    %65 = vector.broadcast %64 : vector<1x128xf32> to vector<16x128xf32>
    %66 = arith.addf %63, %65 : vector<16x128xf32>
    %cst_28 = arith.constant 5.000000e-01 : f32
    %67 = vector.broadcast %cst_28 : f32 to vector<16x128xf32>
    %68 = arith.mulf %67, %66 : vector<16x128xf32>
    %cst_29 = arith.constant 0.707106769 : f32
    %69 = vector.broadcast %cst_29 : f32 to vector<16x128xf32>
    %70 = arith.mulf %66, %69 : vector<16x128xf32>
    %71 = math.erf %70 : vector<16x128xf32>
    %cst_30 = arith.constant 1.000000e+00 : f32
    %72 = vector.broadcast %cst_30 : f32 to vector<16x128xf32>
    %73 = arith.addf %72, %71 : vector<16x128xf32>
    %74 = arith.mulf %68, %73 : vector<16x128xf32>
    %75 = arith.truncf %74 : vector<16x128xf32> to vector<16x128xbf16>
    %c0_31 = arith.constant 0 : index
    %c0_32 = arith.constant 0 : index
    %76 = vector.load %arg8[%c0_31, %c0_32] : memref<128x128xbf16, #tpu.memory_space<vmem>>, vector<128x128xbf16>
    %cst_33 = arith.constant dense<0.000000e+00> : vector<16x128xf32>
    %77 = tpu.matmul %75, %76, %cst_33 {dimension_numbers = #tpu.dot_dimension_numbers<[1], [0], [0], [1], [0, 0, 1, 1], [], []>} : vector<16x128xbf16>, vector<128x128xbf16>, vector<16x128xf32> -> vector<16x128xf32>
    %c0_34 = arith.constant 0 : index
    %c0_35 = arith.constant 0 : index
    %78 = vector.load %arg9[%c0_34, %c0_35] : memref<1x128xf32, #tpu.memory_space<vmem>>, vector<1x128xf32>
    %79 = vector.broadcast %78 : vector<1x128xf32> to vector<16x128xf32>
    %80 = arith.addf %77, %79 : vector<16x128xf32>
    %c0_36 = arith.constant 0 : index
    %c0_37 = arith.constant 0 : index
    %81 = vector.load %arg1[%c0_36, %c0_37] : memref<16x128xf32, #tpu.memory_space<vmem>>, vector<16x128xf32>
    %82 = arith.addf %80, %81 : vector<16x128xf32>
    %c0_38 = arith.constant 0 : index
    %c0_39 = arith.constant 0 : index
    %83 = vector.load %arg10[%c0_38, %c0_39] : memref<16x128xf32, #tpu.memory_space<vmem>>, vector<16x128xf32>
    tpu.vector_store %arg10[%c0_38, %c0_39], %82 {strides = array<i32>} : memref<16x128xf32, #tpu.memory_space<vmem>>, vector<16x128xf32>,
    return
  }
  func.func @transform_0(%arg0: i32) -> (i32, i32) {
    %c0_i32 = arith.constant 0 : i32
    %c0_i32_0 = arith.constant 0 : i32
    return %arg0, %c0_i32 : i32, i32
  }
  func.func @transform_1(%arg0: i32) -> (i32, i32) {
    %c0_i32 = arith.constant 0 : i32
    %c0_i32_0 = arith.constant 0 : i32
    %c0_i32_1 = arith.constant 0 : i32
    return %c0_i32, %c0_i32_0 : i32, i32
  }
  func.func @transform_2(%arg0: i32) -> (i32, i32) {
    %c0_i32 = arith.constant 0 : i32
    %c0_i32_0 = arith.constant 0 : i32
    %c0_i32_1 = arith.constant 0 : i32
    return %c0_i32, %c0_i32_0 : i32, i32
  }
  func.func @transform_3(%arg0: i32) -> (i32, i32) {
    %c0_i32 = arith.constant 0 : i32
    %c0_i32_0 = arith.constant 0 : i32
    %c0_i32_1 = arith.constant 0 : i32
    return %c0_i32, %c0_i32_0 : i32, i32
  }
  func.func @transform_4(%arg0: i32) -> (i32, i32) {
    %c0_i32 = arith.constant 0 : i32
    %c0_i32_0 = arith.constant 0 : i32
    %c0_i32_1 = arith.constant 0 : i32
    return %c0_i32, %c0_i32_0 : i32, i32
  }
  func.func @transform_5(%arg0: i32) -> (i32, i32) {
    %c0_i32 = arith.constant 0 : i32
    %c0_i32_0 = arith.constant 0 : i32
    %c0_i32_1 = arith.constant 0 : i32
    return %c0_i32, %c0_i32_0 : i32, i32
  }
  func.func @transform_6(%arg0: i32) -> (i32, i32) {
    %c0_i32 = arith.constant 0 : i32
    %c0_i32_0 = arith.constant 0 : i32
    %c0_i32_1 = arith.constant 0 : i32
    return %c0_i32, %c0_i32_0 : i32, i32
  }
  func.func @transform_7(%arg0: i32) -> (i32, i32) {
    %c0_i32 = arith.constant 0 : i32
    %c0_i32_0 = arith.constant 0 : i32
    %c0_i32_1 = arith.constant 0 : i32
    return %c0_i32, %c0_i32_0 : i32, i32
  }
  func.func @transform_8(%arg0: i32) -> (i32, i32) {
    %c0_i32 = arith.constant 0 : i32
    %c0_i32_0 = arith.constant 0 : i32
    %c0_i32_1 = arith.constant 0 : i32
    return %c0_i32, %c0_i32_0 : i32, i32
  }
  func.func @transform_9(%arg0: i32) -> (i32, i32) {
    %c0_i32 = arith.constant 0 : i32
    %c0_i32_0 = arith.constant 0 : i32
    return %arg0, %c0_i32 : i32, i32
  }
}

</mosaic_0001>

<bundles_post_ra>
// kernel: tpu_custom_call.1
= control target key start
LH: loop header
LB: loop body
LE: loop exit
PB: predicated region body
PF: predicated region fallthrough
CT: control target
= control target key end

     0   :  { %14 = vsyncpa [#allocation3], 0  ;;  %s773_s0 = inlined_call_operand.hbm [shape: f32[16,128], index: 0, kind: input, shape index: {}]   ;;  %s774_s1 = inlined_call_operand.vmem [shape: f32[1,128], index: 1, kind: input, shape index: {}]   ;;  %s775_s2 = inlined_call_operand.vmem [shape: f32[1,128], index: 2, kind: input, shape index: {}]   ;;  %s776_s3 = inlined_call_operand.hbm [shape: bf16[128,128], index: 3, kind: input, shape index: {}]   ;;  %s777_s4 = inlined_call_operand.vmem [shape: f32[1,128], index: 4, kind: input, shape index: {}]   ;;  %s778_s5 = inlined_call_operand.vmem [shape: f32[1,128], index: 5, kind: input, shape index: {}]   ;;  %s779_s6 = inlined_call_operand.vmem [shape: f32[1,128], index: 6, kind: input, shape index: {}]   ;;  %s780_s7 = inlined_call_operand.hbm [shape: bf16[128,128], index: 7, kind: input, shape index: {}]   ;;  %s781_s8 = inlined_call_operand.vmem [shape: f32[1,128], index: 8, kind: input, shape index: {}]   ;;  %s782_s9 = inlined_call_operand.hbm [shape: f32[16,128], index: 9, kind: output, shape index: {}]  }
   0x1   :  { %15 = vsyncpa [#allocation6], 0 }
   0x2   :  { %16 = vsyncpa [#allocation4], 0  ;;  %s645_s30 = smov [#allocation5]  }
   0x3   :  { %s38_s10 = sshll.u32 %s645_s30, 4  ;;  %s39_s10 = int_to_ptr.vmem [resolvable:$true] %s38_s10 }
   0x4   :  { %s567_s11 = scalar_lea.vmem %s39_s10, 1024  ;;  %p572_p1 = scmp.lt.s32.totalorder %s39_s10, %s39_s10 }
   0x5   :  { %p568_p0 = scmp.ne.s32.totalorder %s39_s10, %s567_s11  ;;  %p573_p2 = scmp.lt.s32.totalorder %s567_s11, %s567_s11 }
   0x7   :  { %p574_p3 = por %p573_p2, %p572_p1 }
   0x9   :  { %p575_p4 = pnand %p574_p3, %p568_p0 }
   0xb   :  { %578 = shalt.err (!%p575_p4)
}
   0xc   :  { %s646_s12 = smov 64   ;;  %s647_s13 = smov 4  }
   0xd   :  { %44 = dma.hbm_to_vmem [thread:$0]  %s776_s3, 1024, %s39_s10, [#allocation6], %s646_s12, %s646_s12, %s647_s13  }
   0xe   :  { %s648_s16 = smov [#allocation2]  }
   0xf   :  { %s22_s17 = sshll.u32 %s648_s16, 4  ;;  %s23_s17 = int_to_ptr.vmem [resolvable:$true] %s22_s17 }
  0x10   :  { %s587_s18 = scalar_lea.vmem %s23_s17, 256  ;;  %p592_p6 = scmp.lt.s32.totalorder %s23_s17, %s23_s17 }
  0x11   :  { %p588_p5 = scmp.ne.s32.totalorder %s23_s17, %s587_s18  ;;  %p593_p7 = scmp.lt.s32.totalorder %s587_s18, %s587_s18 }
  0x13   :  { %p594_p8 = por %p593_p7, %p592_p6 }
  0x15   :  { %p595_p9 = pnand %p594_p8, %p588_p5 }
  0x17   :  { %598 = shalt.err (!%p595_p9)
}
  0x18   :  { %s649_s19 = smov 128   ;;  %s650_s20 = smov 8  }
  0x19   :  { %28 = dma.hbm_to_vmem [thread:$0]  %s773_s0, 256, %s23_s17, [#allocation3], %s649_s19, %s649_s19, %s650_s20  }
  0x1a   :  { %s651_s3 = smov [#allocation7]  }
  0x1b   :  { %s56_s23 = sshll.u32 %s651_s3, 4  ;;  %s57_s23 = int_to_ptr.vmem [resolvable:$true] %s56_s23 }
  0x1c   :  { %s607_s24 = scalar_lea.vmem %s57_s23, 1024  ;;  %p612_p11 = scmp.lt.s32.totalorder %s57_s23, %s57_s23 }
  0x1d   :  { %p608_p10 = scmp.ne.s32.totalorder %s57_s23, %s607_s24  ;;  %p613_p12 = scmp.lt.s32.totalorder %s607_s24, %s607_s24 }
  0x1f   :  { %p614_p13 = por %p613_p12, %p612_p11 }
  0x21   :  { %p615_p0 = pnand %p614_p13, %p608_p10 }
  0x23   :  { %618 = shalt.err (!%p615_p0)
}
  0x24   :  { %62 = dma.hbm_to_vmem [thread:$0]  %s780_s7, 1024, %s57_s23, [#allocation6], %s646_s12, %s646_s12, %s647_s13  }
  0x25   :  { %639 = dma.done.wait [#allocation3], 256  }
  0x26   :  { %640 = vsyncadd [#allocation3], 4294967040 }
  0x27   :  { %641 = dma.done.wait [#allocation6], 2048  }
  0x28   :  { %642 = vsyncadd [#allocation6], 4294965248  ;;  %v717_v0 = vld [vmem:[#allocation2] sm:$0xff]  ;;  %v719_v1 = vld [vmem:[#allocation2 + $0x8] sm:$0xff]  ;;  %v652_v5 = vmov 0.0   ;;  %vm653_vm0 = vmmov 0  }
  0x29   :  { %77 = vadd.xlane.f32.xlu0 %v717_v0  ;;  %v83_v2 = vmul.f32 %v717_v0, %v717_v0  ;;  %v84_v3 = vmul.f32 %v719_v1, %v719_v1  ;;  %v527_v4 = vld [vmem:[#allocation5 + $0x38] sm:$0xff]   ;;  %477 = vmatprep.subr.bf16.mxu0 %v652_v5  ;;  %v528_v6 = vld [vmem:[#allocation5 + $0x30] sm:$0xff]   ;;  %v529_v7 = vld [vmem:[#allocation5 + $0x28] sm:$0xff]   ;;  %s654_s11 = smov [#allocation8]  }
  0x2a   :  { %493 = vmatprep.mubr.msk.bf16.mxu0 %vm653_vm0, %v652_v5  ;;  %478 = vmatpush3.bf16.msra.mxu0 %v527_v4  ;;  %v530_v8 = vld [vmem:[#allocation5 + $0x20] sm:$0xff]   ;;  %v531_v9 = vld [vmem:[#allocation5 + $0x18] sm:$0xff]   ;;  %v532_v10 = vld [vmem:[#allocation5 + $0x10] sm:$0xff]   ;;  %s424_s12 = sshll.u32 %s654_s11, 4  ;;  %s425_s12 = int_to_ptr.vmem [resolvable:$true] %s424_s12 }
  0x2b   :  { %85 = vadd.xlane.f32.xlu1 %v83_v2  ;;  %497 = vmatprep.subr.bf16.mxu1 %v652_v5  ;;  %v533_v11 = vld [vmem:[#allocation5 + $0x8] sm:$0xff]   ;;  %v534_v12 = vld [vmem:[#allocation5] sm:$0xff]   ;;  %v437_v31 = vld [vmem:[%s774_s1] ss:$0 sm:$0xff]  ;;  %s619_s13 = scalar_lea.vmem %s425_s12, 256  ;;  %p624_p2 = scmp.lt.s32.totalorder %s425_s12, %s425_s12 }
  0x2c   :  { %479 = vmatprep.subr.bf16.mxu0 %v652_v5  ;;  %513 = vmatprep.mubr.msk.bf16.mxu1 %vm653_vm0, %v652_v5  ;;  %v438_v33 = vld [vmem:[%s775_s2] ss:$0 sm:$0xff]  ;;  %v535_v61 = vld [vmem:[#allocation7 + $0x38] sm:$0xff]   ;;  %v537_v63 = vld [vmem:[#allocation7 + $0x28] sm:$0xff]   ;;  %p620_p1 = scmp.ne.s32.totalorder %s425_s12, %s619_s13  ;;  %p625_p3 = scmp.lt.s32.totalorder %s619_s13, %s619_s13 }
  0x2d   :  { %79 = vadd.xlane.f32.xlu0 %v719_v1  ;;  %v439_v52 = vld [vmem:[%s777_s4] ss:$0 sm:$0xff]  ;;  %498 = vmatpush3.bf16.msra.mxu1 %v535_v61  ;;  %v538_v2 = vld [vmem:[#allocation7 + $0x20] sm:$0xff]  }
  0x2e   :  { %480 = vmatpush3.bf16.msra.mxu0 %v528_v6  ;;  %v536_v62 = vld [vmem:[#allocation7 + $0x30] sm:$0xff]   ;;  %499 = vmatprep.subr.bf16.mxu1 %v652_v5  ;;  %v541_v6 = vld [vmem:[#allocation7 + $0x8] sm:$0xff]   ;;  %p626_p4 = por %p625_p3, %p624_p2 }
  0x2f   :  { %87 = vadd.xlane.f32.xlu1 %v84_v3  ;;  %481 = vmatprep.subr.bf16.mxu0 %v652_v5  ;;  %v539_v3 = vld [vmem:[#allocation7 + $0x18] sm:$0xff]   ;;  %v540_v4 = vld [vmem:[#allocation7 + $0x10] sm:$0xff]  }
  0x30   :  { %p627_p5 = pnand %p626_p4, %p620_p1 }
  0x31   :  { %500 = vmatpush3.bf16.msra.mxu1 %v536_v62 }
  0x32   :  { %482 = vmatpush3.bf16.msra.mxu0 %v529_v7  ;;  %501 = vmatprep.subr.bf16.mxu1 %v652_v5  ;;  %v542_v7 = vld [vmem:[#allocation7] sm:$0xff]  }
  0x33   :  { %483 = vmatprep.subr.bf16.mxu0 %v652_v5 }
  0x35   :  { %502 = vmatpush3.bf16.msra.mxu1 %v537_v63 }
  0x36   :  { %484 = vmatpush3.bf16.msra.mxu0 %v530_v8  ;;  %503 = vmatprep.subr.bf16.mxu1 %v652_v5 }
  0x37   :  { %485 = vmatprep.subr.bf16.mxu0 %v652_v5 }
  0x39   :  { %504 = vmatpush3.bf16.msra.mxu1 %v538_v2 }
  0x3a   :  { %486 = vmatpush3.bf16.msra.mxu0 %v531_v9  ;;  %505 = vmatprep.subr.bf16.mxu1 %v652_v5 }
  0x3b   :  { %487 = vmatprep.subr.bf16.mxu0 %v652_v5 }
  0x3d   :  { %506 = vmatpush3.bf16.msra.mxu1 %v539_v3 }
  0x3e   :  { %488 = vmatpush3.bf16.msra.mxu0 %v532_v10  ;;  %507 = vmatprep.subr.bf16.mxu1 %v652_v5 }
  0x3f   :  { %489 = vmatprep.subr.bf16.mxu0 %v652_v5 }
  0x41   :  { %508 = vmatpush3.bf16.msra.mxu1 %v540_v4 }
  0x42   :  { %490 = vmatpush3.bf16.msra.mxu0 %v533_v11  ;;  %509 = vmatprep.subr.bf16.mxu1 %v652_v5 }
  0x43   :  { %491 = vmatprep.subr.bf16.mxu0 %v652_v5 }
  0x45   :  { %510 = vmatpush3.bf16.msra.mxu1 %v541_v6 }
  0x46   :  { %492 = vmatpush3.bf16.msra.mxu0 %v534_v12  ;;  %511 = vmatprep.subr.bf16.mxu1 %v652_v5 }
  0x49   :  { %512 = vmatpush3.bf16.msra.mxu1 %v542_v7 }
  0xb2   :  { %v78_v13 = vpop.xlane.xlu0 %77 }
  0xb3   :  { %v81_v14 = vmul.f32 0.03125, %v78_v13 }
  0xb4   :  { %v86_v15 = vpop.xlane.xlu1 %85 }
  0xb5   :  { %v91_v16 = vmul.f32 %v81_v14, %v81_v14  ;;  %v89_v17 = vmul.f32 0.03125, %v86_v15  ;;  %v97_v29 = vsub.f32 %v717_v0, %v81_v14 }
  0xb6   :  { %v80_v18 = vpop.xlane.xlu0 %79 }
  0xb7   :  { %v93_v19 = vsub.f32 %v89_v17, %v91_v16  ;;  %v82_v20 = vmul.f32 0.03125, %v80_v18 }
  0xb8   :  { %v88_v21 = vpop.xlane.xlu1 %87 }
  0xb9   :  { %v95_v22 = vmax.f32 %v93_v19, 0.0  ;;  %v92_v23 = vmul.f32 %v82_v20, %v82_v20  ;;  %v90_v24 = vmul.f32 0.03125, %v88_v21  ;;  %v98_v34 = vsub.f32 %v719_v1, %v82_v20 }
  0xbb   :  { %v99_v25 = vadd.f32 1e-05, %v95_v22  ;;  %v94_v26 = vsub.f32 %v90_v24, %v92_v23 }
  0xbd   :  { %543 = vrsqrt.f32 %v99_v25  ;;  %v96_v27 = vmax.f32 %v94_v26, 0.0  ;;  %v448_v25 = vld [vmem:[%s778_s5] ss:$0 sm:$0xff] }
  0xbf   :  { %v100_v28 = vadd.f32 1e-05, %v96_v27  ;;  %v449_v27 = vld [vmem:[%s779_s6] ss:$0 sm:$0xff] }
  0xc1   :  { %545 = vrsqrt.f32 %v100_v28 }
  0xca   :  { %v544_v30 = vpop.eup %543 }
  0xcb   :  { %v103_v32 = vmul.f32 %v544_v30, %v97_v29 }
  0xcd   :  { %v112_v35 = vmul.f32 %v437_v31, %v103_v32 }
  0xce   :  { %v546_v36 = vpop.eup %545 }
  0xcf   :  { %v104_v37 = vmul.f32 %v546_v36, %v98_v34  ;;  %v121_v38 = vadd.f32 %v438_v33, %v112_v35 }
  0xd1   :  { %v113_v39 = vmul.f32 %v437_v31, %v104_v37  ;;  %v125_v40 = vmul.f32 0.70710677, %v121_v38  ;;  %v123_v46 = vmul.f32 0.5, %v121_v38 }
  0xd3   :  { %v122_v41 = vadd.f32 %v438_v33, %v113_v39  ;;  %547 = verf.f32 %v125_v40 }
  0xd5   :  { %v126_v42 = vmul.f32 0.70710677, %v122_v41  ;;  %v124_v47 = vmul.f32 0.5, %v122_v41 }
  0xd7   :  { %549 = verf.f32 %v126_v42 }
  0xe0   :  { %v548_v43 = vpop.eup %547 }
  0xe1   :  { %v129_v44 = vadd.f32 1.0, %v548_v43 }
  0xe3   :  { %v131_v49 = vmul.f32 %v129_v44, %v123_v46  ;;  %v450_v46 = vld [vmem:[%s781_s8] ss:$0 sm:$0xff] }
  0xe4   :  { %v550_v45 = vpop.eup %549 }
  0xe5   :  { %v130_v48 = vadd.f32 1.0, %v550_v45 }
  0xe7   :  { %v132_v50 = vmul.f32 %v130_v48, %v124_v47 }
  0xe9   :  { %v133_v51 = vpack.c.bf16 %v132_v50, %v131_v49 }
  0xeb   :  { %494 = vmatmul.mubr.bf16.vlgmr.msra.gmra.mxu0 %v133_v51 }
 0x1ab   :  { %v239_v53 = vpop.f32.mrf.mxu0 }
 0x1ac   :  { %v240_v54 = vadd.f32 %v439_v52, %v239_v53 }
 0x1ad   :  { %v495_v55 = vpop.f32.mrf.mxu0 }
 0x1ae   :  { %246 = vadd.xlane.f32.xlu0 %v240_v54  ;;  %v252_v58 = vmul.f32 %v240_v54, %v240_v54 }
 0x1af   :  { %v242_v56 = vpop.f32.mrf.mxu0 }
 0x1b0   :  { %v243_v57 = vadd.f32 %v439_v52, %v242_v56 }
 0x1b1   :  { %v496_v59 = vpop.f32.mrf.mxu0 }
 0x1b2   :  { %254 = vadd.xlane.f32.xlu0 %v252_v58  ;;  %248 = vadd.xlane.f32.xlu1 %v243_v57  ;;  %v253_v60 = vmul.f32 %v243_v57, %v243_v57 }
 0x1b6   :  { %256 = vadd.xlane.f32.xlu1 %v253_v60 }
 0x237   :  { %v247_v8 = vpop.xlane.xlu0 %246 }
 0x238   :  { %v250_v9 = vmul.f32 0.015625, %v247_v8 }
 0x23a   :  { %v260_v12 = vmul.f32 %v250_v9, %v250_v9  ;;  %v266_v5 = vsub.f32 %v240_v54, %v250_v9 }
 0x23b   :  { %v255_v10 = vpop.xlane.xlu0 %254  ;;  %v249_v11 = vpop.xlane.xlu1 %248 }
 0x23c   :  { %v258_v13 = vmul.f32 0.015625, %v255_v10  ;;  %v251_v14 = vmul.f32 0.015625, %v249_v11 }
 0x23e   :  { %v262_v15 = vsub.f32 %v258_v13, %v260_v12  ;;  %v261_v18 = vmul.f32 %v251_v14, %v251_v14  ;;  %v267_v28 = vsub.f32 %v243_v57, %v251_v14 }
 0x23f   :  { %v257_v16 = vpop.xlane.xlu1 %256 }
 0x240   :  { %v264_v17 = vmax.f32 %v262_v15, 0.0  ;;  %v259_v19 = vmul.f32 0.015625, %v257_v16 }
 0x242   :  { %v268_v20 = vadd.f32 1e-05, %v264_v17  ;;  %v263_v21 = vsub.f32 %v259_v19, %v261_v18 }
 0x244   :  { %551 = vrsqrt.f32 %v268_v20  ;;  %v265_v22 = vmax.f32 %v263_v21, 0.0 }
 0x246   :  { %v269_v23 = vadd.f32 1e-05, %v265_v22 }
 0x248   :  { %553 = vrsqrt.f32 %v269_v23 }
 0x251   :  { %v552_v24 = vpop.eup %551 }
 0x252   :  { %v272_v26 = vmul.f32 %v552_v24, %v266_v5 }
 0x254   :  { %v281_v29 = vmul.f32 %v448_v25, %v272_v26 }
 0x255   :  { %v554_v30 = vpop.eup %553 }
 0x256   :  { %v273_v31 = vmul.f32 %v554_v30, %v267_v28  ;;  %v290_v32 = vadd.f32 %v449_v27, %v281_v29 }
 0x258   :  { %v282_v33 = vmul.f32 %v448_v25, %v273_v31  ;;  %v294_v34 = vmul.f32 0.70710677, %v290_v32  ;;  %v292_v40 = vmul.f32 0.5, %v290_v32 }
 0x25a   :  { %v291_v35 = vadd.f32 %v449_v27, %v282_v33  ;;  %555 = verf.f32 %v294_v34 }
 0x25c   :  { %v295_v36 = vmul.f32 0.70710677, %v291_v35  ;;  %v293_v41 = vmul.f32 0.5, %v291_v35 }
 0x25e   :  { %557 = verf.f32 %v295_v36 }
 0x267   :  { %v556_v37 = vpop.eup %555 }
 0x268   :  { %v298_v38 = vadd.f32 1.0, %v556_v37 }
 0x26a   :  { %v300_v43 = vmul.f32 %v298_v38, %v292_v40 }
 0x26b   :  { %v558_v39 = vpop.eup %557 }
 0x26c   :  { %v299_v42 = vadd.f32 1.0, %v558_v39 }
 0x26e   :  { %v301_v44 = vmul.f32 %v299_v42, %v293_v41 }
 0x270   :  { %v302_v45 = vpack.c.bf16 %v301_v44, %v300_v43 }
 0x272   :  { %514 = vmatmul.mubr.bf16.vlgmr.msra.gmra.mxu1 %v302_v45 }
 0x332   :  { %v408_v47 = vpop.f32.mrf.mxu1 }
 0x333   :  { %v409_v48 = vadd.f32 %v450_v46, %v408_v47 }
 0x334   :  { %v515_v49 = vpop.f32.mrf.mxu1 }
 0x335   :  { %v415_v50 = vadd.f32 %v409_v48, %v717_v0 }
 0x336   :  { %v411_v51 = vpop.f32.mrf.mxu1 }
 0x337   :  { %417 = vst [vmem:[#allocation8] sm:$0xff] %v415_v50  ;;  %v412_v52 = vadd.f32 %v450_v46, %v411_v51 }
 0x338   :  { %v516_v53 = vpop.f32.mrf.mxu1 }
 0x339   :  { %v416_v54 = vadd.f32 %v412_v52, %v719_v1 }
 0x33b   :  { %418 = vst [vmem:[#allocation8 + $0x8] sm:$0xff] %v416_v54 }
 0x33c   :  { %630 = shalt.err (!%p627_p5)
}
 0x33d   :  { %430 = dma.vmem_to_hbm [thread:$0]  %s425_s12, 256, %s782_s9, [#allocation4], %s649_s19, %s649_s19, %s650_s20  }
 0x33e   :  { %643 = dma.done.wait [#allocation4], 256  }
 0x33f   :  { %644 = vsyncadd [#allocation4], 4294967040 }
 0x340   :  { %434 = vsyncpa [#allocation3], 1 }
 0x341   :  { %435 = vsyncpa [#allocation6], 1 }
 0x342   :  { %436 = vsyncpa [#allocation4], 1 }

// kernel: tpu_custom_call.1
= control target key start
LH: loop header
LB: loop body
LE: loop exit
PB: predicated region body
PF: predicated region fallthrough
CT: control target
= control target key end

     0   :  { %14 = vsyncpa [#allocation3], 0  ;;  %s773_s0 = inlined_call_operand.hbm [shape: f32[16,128], index: 0, kind: input, shape index: {}]   ;;  %s774_s1 = inlined_call_operand.vmem [shape: f32[1,128], index: 1, kind: input, shape index: {}]   ;;  %s775_s2 = inlined_call_operand.vmem [shape: f32[1,128], index: 2, kind: input, shape index: {}]   ;;  %s776_s3 = inlined_call_operand.hbm [shape: bf16[128,128], index: 3, kind: input, shape index: {}]   ;;  %s777_s4 = inlined_call_operand.vmem [shape: f32[1,128], index: 4, kind: input, shape index: {}]   ;;  %s778_s5 = inlined_call_operand.vmem [shape: f32[1,128], index: 5, kind: input, shape index: {}]   ;;  %s779_s6 = inlined_call_operand.vmem [shape: f32[1,128], index: 6, kind: input, shape index: {}]   ;;  %s780_s7 = inlined_call_operand.hbm [shape: bf16[128,128], index: 7, kind: input, shape index: {}]   ;;  %s781_s8 = inlined_call_operand.vmem [shape: f32[1,128], index: 8, kind: input, shape index: {}]   ;;  %s782_s9 = inlined_call_operand.hbm [shape: f32[16,128], index: 9, kind: output, shape index: {}]  }
   0x1   :  { %15 = vsyncpa [#allocation6], 0 }
   0x2   :  { %16 = vsyncpa [#allocation4], 0  ;;  %s645_s30 = smov [#allocation5]  }
   0x3   :  { %s38_s10 = sshll.u32 %s645_s30, 4  ;;  %s39_s10 = int_to_ptr.vmem [resolvable:$true] %s38_s10 }
   0x4   :  { %s567_s11 = scalar_lea.vmem %s39_s10, 1024  ;;  %p572_p1 = scmp.lt.s32.totalorder %s39_s10, %s39_s10 }
   0x5   :  { %p568_p0 = scmp.ne.s32.totalorder %s39_s10, %s567_s11  ;;  %p573_p2 = scmp.lt.s32.totalorder %s567_s11, %s567_s11 }
   0x7   :  { %p574_p3 = por %p573_p2, %p572_p1 }
   0x9   :  { %p575_p4 = pnand %p574_p3, %p568_p0 }
   0xb   :  { %578 = shalt.err (!%p575_p4)
}
   0xc   :  { %s646_s12 = smov 64   ;;  %s647_s13 = smov 4  }
   0xd   :  { %44 = dma.hbm_to_vmem [thread:$0]  %s776_s3, 1024, %s39_s10, [#allocation6], %s646_s12, %s646_s12, %s647_s13  }
   0xe   :  { %s648_s16 = smov [#allocation2]  }
   0xf   :  { %s22_s17 = sshll.u32 %s648_s16, 4  ;;  %s23_s17 = int_to_ptr.vmem [resolvable:$true] %s22_s17 }
  0x10   :  { %s587_s18 = scalar_lea.vmem %s23_s17, 256  ;;  %p592_p6 = scmp.lt.s32.totalorder %s23_s17, %s23_s17 }
  0x11   :  { %p588_p5 = scmp.ne.s32.totalorder %s23_s17, %s587_s18  ;;  %p593_p7 = scmp.lt.s32.totalorder %s587_s18, %s587_s18 }
  0x13   :  { %p594_p8 = por %p593_p7, %p592_p6 }
  0x15   :  { %p595_p9 = pnand %p594_p8, %p588_p5 }
  0x17   :  { %598 = shalt.err (!%p595_p9)
}
  0x18   :  { %s649_s19 = smov 128   ;;  %s650_s20 = smov 8  }
  0x19   :  { %28 = dma.hbm_to_vmem [thread:$0]  %s773_s0, 256, %s23_s17, [#allocation3], %s649_s19, %s649_s19, %s650_s20  }
  0x1a   :  { %s651_s3 = smov [#allocation7]  }
  0x1b   :  { %s56_s23 = sshll.u32 %s651_s3, 4  ;;  %s57_s23 = int_to_ptr.vmem [resolvable:$true] %s56_s23 }
  0x1c   :  { %s607_s24 = scalar_lea.vmem %s57_s23, 1024  ;;  %p612_p11 = scmp.lt.s32.totalorder %s57_s23, %s57_s23 }
  0x1d   :  { %p608_p10 = scmp.ne.s32.totalorder %s57_s23, %s607_s24  ;;  %p613_p12 = scmp.lt.s32.totalorder %s607_s24, %s607_s24 }
  0x1f   :  { %p614_p13 = por %p613_p12, %p612_p11 }
  0x21   :  { %p615_p0 = pnand %p614_p13, %p608_p10 }
  0x23   :  { %618 = shalt.err (!%p615_p0)
}
  0x24   :  { %62 = dma.hbm_to_vmem [thread:$0]  %s780_s7, 1024, %s57_s23, [#allocation6], %s646_s12, %s646_s12, %s647_s13  }
  0x25   :  { %639 = dma.done.wait [#allocation3], 256  }
  0x26   :  { %640 = vsyncadd [#allocation3], 4294967040 }
  0x27   :  { %641 = dma.done.wait [#allocation6], 2048  }
  0x28   :  { %642 = vsyncadd [#allocation6], 4294965248  ;;  %v717_v0 = vld [vmem:[#allocation2] sm:$0xff]  ;;  %v719_v1 = vld [vmem:[#allocation2 + $0x8] sm:$0xff]  ;;  %v652_v5 = vmov 0.0   ;;  %vm653_vm0 = vmmov 0  }
  0x29   :  { %77 = vadd.xlane.f32.xlu0 %v717_v0  ;;  %v83_v2 = vmul.f32 %v717_v0, %v717_v0  ;;  %v84_v3 = vmul.f32 %v719_v1, %v719_v1  ;;  %v527_v4 = vld [vmem:[#allocation5 + $0x38] sm:$0xff]   ;;  %477 = vmatprep.subr.bf16.mxu0 %v652_v5  ;;  %v528_v6 = vld [vmem:[#allocation5 + $0x30] sm:$0xff]   ;;  %v529_v7 = vld [vmem:[#allocation5 + $0x28] sm:$0xff]   ;;  %s654_s11 = smov [#allocation8]  }
  0x2a   :  { %493 = vmatprep.mubr.msk.bf16.mxu0 %vm653_vm0, %v652_v5  ;;  %478 = vmatpush3.bf16.msra.mxu0 %v527_v4  ;;  %v530_v8 = vld [vmem:[#allocation5 + $0x20] sm:$0xff]   ;;  %v531_v9 = vld [vmem:[#allocation5 + $0x18] sm:$0xff]   ;;  %v532_v10 = vld [vmem:[#allocation5 + $0x10] sm:$0xff]   ;;  %s424_s12 = sshll.u32 %s654_s11, 4  ;;  %s425_s12 = int_to_ptr.vmem [resolvable:$true] %s424_s12 }
  0x2b   :  { %85 = vadd.xlane.f32.xlu1 %v83_v2  ;;  %497 = vmatprep.subr.bf16.mxu1 %v652_v5  ;;  %v533_v11 = vld [vmem:[#allocation5 + $0x8] sm:$0xff]   ;;  %v534_v12 = vld [vmem:[#allocation5] sm:$0xff]   ;;  %v437_v31 = vld [vmem:[%s774_s1] ss:$0 sm:$0xff]  ;;  %s619_s13 = scalar_lea.vmem %s425_s12, 256  ;;  %p624_p2 = scmp.lt.s32.totalorder %s425_s12, %s425_s12 }
  0x2c   :  { %479 = vmatprep.subr.bf16.mxu0 %v652_v5  ;;  %513 = vmatprep.mubr.msk.bf16.mxu1 %vm653_vm0, %v652_v5  ;;  %v438_v33 = vld [vmem:[%s775_s2] ss:$0 sm:$0xff]  ;;  %v535_v61 = vld [vmem:[#allocation7 + $0x38] sm:$0xff]   ;;  %v537_v63 = vld [vmem:[#allocation7 + $0x28] sm:$0xff]   ;;  %p620_p1 = scmp.ne.s32.totalorder %s425_s12, %s619_s13  ;;  %p625_p3 = scmp.lt.s32.totalorder %s619_s13, %s619_s13 }
  0x2d   :  { %79 = vadd.xlane.f32.xlu0 %v719_v1  ;;  %v439_v52 = vld [vmem:[%s777_s4] ss:$0 sm:$0xff]  ;;  %498 = vmatpush3.bf16.msra.mxu1 %v535_v61  ;;  %v538_v2 = vld [vmem:[#allocation7 + $0x20] sm:$0xff]  }
  0x2e   :  { %480 = vmatpush3.bf16.msra.mxu0 %v528_v6  ;;  %v536_v62 = vld [vmem:[#allocation7 + $0x30] sm:$0xff]   ;;  %499 = vmatprep.subr.bf16.mxu1 %v652_v5  ;;  %v541_v6 = vld [vmem:[#allocation7 + $0x8] sm:$0xff]   ;;  %p626_p4 = por %p625_p3, %p624_p2 }
  0x2f   :  { %87 = vadd.xlane.f32.xlu1 %v84_v3  ;;  %481 = vmatprep.subr.bf16.mxu0 %v652_v5  ;;  %v539_v3 = vld [vmem:[#allocation7 + $0x18] sm:$0xff]   ;;  %v540_v4 = vld [vmem:[#allocation7 + $0x10] sm:$0xff]  }
  0x30   :  { %p627_p5 = pnand %p626_p4, %p620_p1 }
  0x31   :  { %500 = vmatpush3.bf16.msra.mxu1 %v536_v62 }
  0x32   :  { %482 = vmatpush3.bf16.msra.mxu0 %v529_v7  ;;  %501 = vmatprep.subr.bf16.mxu1 %v652_v5  ;;  %v542_v7 = vld [vmem:[#allocation7] sm:$0xff]  }
  0x33   :  { %483 = vmatprep.subr.bf16.mxu0 %v652_v5 }
  0x35   :  { %502 = vmatpush3.bf16.msra.mxu1 %v537_v63 }
  0x36   :  { %484 = vmatpush3.bf16.msra.mxu0 %v530_v8  ;;  %503 = vmatprep.subr.bf16.mxu1 %v652_v5 }
  0x37   :  { %485 = vmatprep.subr.bf16.mxu0 %v652_v5 }
  0x39   :  { %504 = vmatpush3.bf16.msra.mxu1 %v538_v2 }
  0x3a   :  { %486 = vmatpush3.bf16.msra.mxu0 %v531_v9  ;;  %505 = vmatprep.subr.bf16.mxu1 %v652_v5 }
  0x3b   :  { %487 = vmatprep.subr.bf16.mxu0 %v652_v5 }
  0x3d   :  { %506 = vmatpush3.bf16.msra.mxu1 %v539_v3 }
  0x3e   :  { %488 = vmatpush3.bf16.msra.mxu0 %v532_v10  ;;  %507 = vmatprep.subr.bf16.mxu1 %v652_v5 }
  0x3f   :  { %489 = vmatprep.subr.bf16.mxu0 %v652_v5 }
  0x41   :  { %508 = vmatpush3.bf16.msra.mxu1 %v540_v4 }
  0x42   :  { %490 = vmatpush3.bf16.msra.mxu0 %v533_v11  ;;  %509 = vmatprep.subr.bf16.mxu1 %v652_v5 }
  0x43   :  { %491 = vmatprep.subr.bf16.mxu0 %v652_v5 }
  0x45   :  { %510 = vmatpush3.bf16.msra.mxu1 %v541_v6 }
  0x46   :  { %492 = vmatpush3.bf16.msra.mxu0 %v534_v12  ;;  %511 = vmatprep.subr.bf16.mxu1 %v652_v5 }
  0x49   :  { %512 = vmatpush3.bf16.msra.mxu1 %v542_v7 }
  0xb2   :  { %v78_v13 = vpop.xlane.xlu0 %77 }
  0xb3   :  { %v81_v14 = vmul.f32 0.03125, %v78_v13 }
  0xb4   :  { %v86_v15 = vpop.xlane.xlu1 %85 }
  0xb5   :  { %v91_v16 = vmul.f32 %v81_v14, %v81_v14  ;;  %v89_v17 = vmul.f32 0.03125, %v86_v15  ;;  %v97_v29 = vsub.f32 %v717_v0, %v81_v14 }
  0xb6   :  { %v80_v18 = vpop.xlane.xlu0 %79 }
  0xb7   :  { %v93_v19 = vsub.f32 %v89_v17, %v91_v16  ;;  %v82_v20 = vmul.f32 0.03125, %v80_v18 }
  0xb8   :  { %v88_v21 = vpop.xlane.xlu1 %87 }
  0xb9   :  { %v95_v22 = vmax.f32 %v93_v19, 0.0  ;;  %v92_v23 = vmul.f32 %v82_v20, %v82_v20  ;;  %v90_v24 = vmul.f32 0.03125, %v88_v21  ;;  %v98_v34 = vsub.f32 %v719_v1, %v82_v20 }
  0xbb   :  { %v99_v25 = vadd.f32 1e-05, %v95_v22  ;;  %v94_v26 = vsub.f32 %v90_v24, %v92_v23 }
  0xbd   :  { %543 = vrsqrt.f32 %v99_v25  ;;  %v96_v27 = vmax.f32 %v94_v26, 0.0  ;;  %v448_v25 = vld [vmem:[%s778_s5] ss:$0 sm:$0xff] }
  0xbf   :  { %v100_v28 = vadd.f32 1e-05, %v96_v27  ;;  %v449_v27 = vld [vmem:[%s779_s6] ss:$0 sm:$0xff] }
  0xc1   :  { %545 = vrsqrt.f32 %v100_v28 }
  0xca   :  { %v544_v30 = vpop.eup %543 }
  0xcb   :  { %v103_v32 = vmul.f32 %v544_v30, %v97_v29 }
  0xcd   :  { %v112_v35 = vmul.f32 %v437_v31, %v103_v32 }
  0xce   :  { %v546_v36 = vpop.eup %545 }
  0xcf   :  { %v104_v37 = vmul.f32 %v546_v36, %v98_v34  ;;  %v121_v38 = vadd.f32 %v438_v33, %v112_v35 }
  0xd1   :  { %v113_v39 = vmul.f32 %v437_v31, %v104_v37  ;;  %v125_v40 = vmul.f32 0.70710677, %v121_v38  ;;  %v123_v46 = vmul.f32 0.5, %v121_v38 }
  0xd3   :  { %v122_v41 = vadd.f32 %v438_v33, %v113_v39  ;;  %547 = verf.f32 %v125_v40 }
  0xd5   :  { %v126_v42 = vmul.f32 0.70710677, %v122_v41  ;;  %v124_v47 = vmul.f32 0.5, %v122_v41 }
  0xd7   :  { %549 = verf.f32 %v126_v42 }
  0xe0   :  { %v548_v43 = vpop.eup %547 }
  0xe1   :  { %v129_v44 = vadd.f32 1.0, %v548_v43 }
  0xe3   :  { %v131_v49 = vmul.f32 %v129_v44, %v123_v46  ;;  %v450_v46 = vld [vmem:[%s781_s8] ss:$0 sm:$0xff] }
  0xe4   :  { %v550_v45 = vpop.eup %549 }
  0xe5   :  { %v130_v48 = vadd.f32 1.0, %v550_v45 }
  0xe7   :  { %v132_v50 = vmul.f32 %v130_v48, %v124_v47 }
  0xe9   :  { %v133_v51 = vpack.c.bf16 %v132_v50, %v131_v49 }
  0xeb   :  { %494 = vmatmul.mubr.bf16.vlgmr.msra.gmra.mxu0 %v133_v51 }
 0x1ab   :  { %v239_v53 = vpop.f32.mrf.mxu0 }
 0x1ac   :  { %v240_v54 = vadd.f32 %v439_v52, %v239_v53 }
 0x1ad   :  { %v495_v55 = vpop.f32.mrf.mxu0 }
 0x1ae   :  { %246 = vadd.xlane.f32.xlu0 %v240_v54  ;;  %v252_v58 = vmul.f32 %v240_v54, %v240_v54 }
 0x1af   :  { %v242_v56 = vpop.f32.mrf.mxu0 }
 0x1b0   :  { %v243_v57 = vadd.f32 %v439_v52, %v242_v56 }
 0x1b1   :  { %v496_v59 = vpop.f32.mrf.mxu0 }
 0x1b2   :  { %254 = vadd.xlane.f32.xlu0 %v252_v58  ;;  %248 = vadd.xlane.f32.xlu1 %v243_v57  ;;  %v253_v60 = vmul.f32 %v243_v57, %v243_v57 }
 0x1b6   :  { %256 = vadd.xlane.f32.xlu1 %v253_v60 }
 0x237   :  { %v247_v8 = vpop.xlane.xlu0 %246 }
 0x238   :  { %v250_v9 = vmul.f32 0.015625, %v247_v8 }
 0x23a   :  { %v260_v12 = vmul.f32 %v250_v9, %v250_v9  ;;  %v266_v5 = vsub.f32 %v240_v54, %v250_v9 }
 0x23b   :  { %v255_v10 = vpop.xlane.xlu0 %254  ;;  %v249_v11 = vpop.xlane.xlu1 %248 }
 0x23c   :  { %v258_v13 = vmul.f32 0.015625, %v255_v10  ;;  %v251_v14 = vmul.f32 0.015625, %v249_v11 }
 0x23e   :  { %v262_v15 = vsub.f32 %v258_v13, %v260_v12  ;;  %v261_v18 = vmul.f32 %v251_v14, %v251_v14  ;;  %v267_v28 = vsub.f32 %v243_v57, %v251_v14 }
 0x23f   :  { %v257_v16 = vpop.xlane.xlu1 %256 }
 0x240   :  { %v264_v17 = vmax.f32 %v262_v15, 0.0  ;;  %v259_v19 = vmul.f32 0.015625, %v257_v16 }
 0x242   :  { %v268_v20 = vadd.f32 1e-05, %v264_v17  ;;  %v263_v21 = vsub.f32 %v259_v19, %v261_v18 }
 0x244   :  { %551 = vrsqrt.f32 %v268_v20  ;;  %v265_v22 = vmax.f32 %v263_v21, 0.0 }
 0x246   :  { %v269_v23 = vadd.f32 1e-05, %v265_v22 }
 0x248   :  { %553 = vrsqrt.f32 %v269_v23 }
 0x251   :  { %v552_v24 = vpop.eup %551 }
 0x252   :  { %v272_v26 = vmul.f32 %v552_v24, %v266_v5 }
 0x254   :  { %v281_v29 = vmul.f32 %v448_v25, %v272_v26 }
 0x255   :  { %v554_v30 = vpop.eup %553 }
 0x256   :  { %v273_v31 = vmul.f32 %v554_v30, %v267_v28  ;;  %v290_v32 = vadd.f32 %v449_v27, %v281_v29 }
 0x258   :  { %v282_v33 = vmul.f32 %v448_v25, %v273_v31  ;;  %v294_v34 = vmul.f32 0.70710677, %v290_v32  ;;  %v292_v40 = vmul.f32 0.5, %v290_v32 }
 0x25a   :  { %v291_v35 = vadd.f32 %v449_v27, %v282_v33  ;;  %555 = verf.f32 %v294_v34 }
 0x25c   :  { %v295_v36 = vmul.f32 0.70710677, %v291_v35  ;;  %v293_v41 = vmul.f32 0.5, %v291_v35 }
 0x25e   :  { %557 = verf.f32 %v295_v36 }
 0x267   :  { %v556_v37 = vpop.eup %555 }
 0x268   :  { %v298_v38 = vadd.f32 1.0, %v556_v37 }
 0x26a   :  { %v300_v43 = vmul.f32 %v298_v38, %v292_v40 }
 0x26b   :  { %v558_v39 = vpop.eup %557 }
 0x26c   :  { %v299_v42 = vadd.f32 1.0, %v558_v39 }
 0x26e   :  { %v301_v44 = vmul.f32 %v299_v42, %v293_v41 }
 0x270   :  { %v302_v45 = vpack.c.bf16 %v301_v44, %v300_v43 }
 0x272   :  { %514 = vmatmul.mubr.bf16.vlgmr.msra.gmra.mxu1 %v302_v45 }
 0x332   :  { %v408_v47 = vpop.f32.mrf.mxu1 }
 0x333   :  { %v409_v48 = vadd.f32 %v450_v46, %v408_v47 }
 0x334   :  { %v515_v49 = vpop.f32.mrf.mxu1 }
 0x335   :  { %v415_v50 = vadd.f32 %v409_v48, %v717_v0 }
 0x336   :  { %v411_v51 = vpop.f32.mrf.mxu1 }
 0x337   :  { %417 = vst [vmem:[#allocation8] sm:$0xff] %v415_v50  ;;  %v412_v52 = vadd.f32 %v450_v46, %v411_v51 }
 0x338   :  { %v516_v53 = vpop.f32.mrf.mxu1 }
 0x339   :  { %v416_v54 = vadd.f32 %v412_v52, %v719_v1 }
 0x33b   :  { %418 = vst [vmem:[#allocation8 + $0x8] sm:$0xff] %v416_v54 }
 0x33c   :  { %630 = shalt.err (!%p627_p5)
}
 0x33d   :  { %430 = dma.vmem_to_hbm [thread:$0]  %s425_s12, 256, %s782_s9, [#allocation4], %s649_s19, %s649_s19, %s650_s20  }
 0x33e   :  { %643 = dma.done.wait [#allocation4], 256  }
 0x33f   :  { %644 = vsyncadd [#allocation4], 4294967040 }
 0x340   :  { %434 = vsyncpa [#allocation3], 1 }
 0x341   :  { %435 = vsyncpa [#allocation6], 1 }
 0x342   :  { %436 = vsyncpa [#allocation4], 1 }

</bundles_post_ra>
